<compile_context>
chip_gen: v7x
topology: tpu7x:2x2x1
jax: 0.10.0
libtpu: 0.0.40
codegen_flags: <defaults>
</compile_context>

<pallas_src>
import jax
import jax.numpy as jnp
from jax.experimental import pallas as pl
from jax.experimental.pallas import tpu as pltpu


def _hbm_copy_kernel(feat_hbm, out_hbm, sem):
    # forward(x) -> self.feature : a single HBM->HBM DMA, no VMEM staging.
    cp = pltpu.make_async_copy(feat_hbm, out_hbm, sem)
    cp.start()
    cp.wait()


def siam_generator_determine_forward(x, feature):
    """Pallas implementation of SiamGeneratorDetermine.forward.

    Args:
      x:       unused image input (NCHW float32). Kept for interface parity,
               intentionally NOT passed to the pallas_call (no HBM->VMEM DMA).
      feature: parameter of shape [N, last_channel].
    Returns:
      Array equal to `feature` (same shape/dtype).
    """
    del x  # forward ignores its input entirely

    nbytes = feature.size * jnp.dtype(feature.dtype).itemsize

    return pl.pallas_call(
        _hbm_copy_kernel,
        out_shape=jax.ShapeDtypeStruct(feature.shape, feature.dtype),
        # Leave both arrays in place (HBM); the kernel DMAs directly between
        # them instead of auto-pipelining through VMEM.
        in_specs=[pl.BlockSpec(memory_space=pl.ANY)],
        out_specs=pl.BlockSpec(memory_space=pl.ANY),
        scratch_shapes=[pltpu.SemaphoreType.DMA],
        # Pure-DMA op: 0 flops, read + write of the feature bytes.
        cost_estimate=pl.CostEstimate(
            flops=0, transcendentals=0, bytes_accessed=2 * int(nbytes)
        ),
    )(feature)


def make_params(last_channel=8, loss_type="celoss", feature_rows=16, seed=0):
    """Deterministically initialize the module's parameters (synthetic)."""
    key = jax.random.PRNGKey(seed)
    k_feat, k_noise = jax.random.split(key)
    last_output = 2 if loss_type == "celoss" else 1
    # Stand-in for torch.load('./data/features/net.pth')[:, :last_channel]
    feature = jax.random.normal(
        k_feat, (feature_rows, last_channel), dtype=jnp.float32
    )
    # random_noise buffer (unused in forward, kept for parameter parity)
    random_noise = jax.random.uniform(
        k_noise, (16, last_channel * last_output, 8, 8), dtype=jnp.float32
    )
    return {"feature": feature, "random_noise": random_noise}


if __name__ == "__main__":
    params = make_params(last_channel=8, loss_type="celoss", feature_rows=16)

    key = jax.random.PRNGKey(0)
    # Small NCHW input consistent with conv1 (3 input channels); unused by forward.
    x = jax.random.normal(key, (2, 3, 16, 16), dtype=jnp.float32)

    out = siam_generator_determine_forward(x, params["feature"])
    out = jax.block_until_ready(out)

    # Sanity check: forward(x) == feature exactly (bitwise identity copy).
    assert out.shape == params["feature"].shape
    assert out.dtype == params["feature"].dtype
    assert bool(jnp.all(out == params["feature"]))

    print("KERNEL_OK")
</pallas_src>

<mosaic_0001>
module attributes {stable_mosaic.version = 11 : i64} {
  func.func @_hbm_copy_kernel(%arg0: memref<16x8xf32, #tpu.memory_space<any>>, %arg1: memref<16x8xf32, #tpu.memory_space<any>>, %arg2: memref<!tpu.dma_semaphore, #tpu.memory_space<semaphore_mem>>) attributes {dimension_semantics = [], scalar_prefetch = 0 : i64, scratch_operands = 1 : i64, tpu.core_type = #tpu.core_type<tc>} {
    tpu.enqueue_dma source(%arg0 : memref<16x8xf32, #tpu.memory_space<any>>) target(%arg1 : memref<16x8xf32, #tpu.memory_space<any>>) target_semaphore(%arg2 : memref<!tpu.dma_semaphore, #tpu.memory_space<semaphore_mem>>)
    tpu.wait_dma2 semaphore(%arg2 : memref<!tpu.dma_semaphore, #tpu.memory_space<semaphore_mem>>) src(%arg0 : memref<16x8xf32, #tpu.memory_space<any>>) dst(%arg1 : memref<16x8xf32, #tpu.memory_space<any>>)
    return
  }
}

</mosaic_0001>

<bundles_post_ra>
// kernel: tpu_custom_call.1
= control target key start
LH: loop header
LB: loop body
LE: loop exit
PB: predicated region body
PF: predicated region fallthrough
CT: control target
= control target key end

     0   :  { %s92_s0 = inlined_call_operand.vmem [shape: f32[16,8], index: 0, kind: input, shape index: {}]   ;;  %s93_s1 = inlined_call_operand.vmem [shape: f32[16,8], index: 1, kind: output, shape index: {}]  }
   0x1   :  { %v38_v0 = vld [vmem:[%s92_s0] sm:$0xff]  ;;  %v40_v1 = vld [vmem:[%s92_s0 + $0x8] sm:$0xff] }
   0x2   :  { %39 = vst [vmem:[%s93_s1] sm:$0xff] %v38_v0  ;;  %41 = vst [vmem:[%s93_s1 + $0x8] sm:$0xff] %v40_v1 }
   0x3   :  { %49 = vsyncadd [#allocation2], 256 }
   0x4   :  { %68 = dma.done.wait [#allocation2], 256 }
   0x5   :  { %69 = vsyncadd [#allocation2], 4294967040 }
   0x6   :  { %53 = vsyncmov [#allocation2] }
   0x9   :  { %s54_s14 = vpop.sfrf %53 }
   0xa   :  { %p67_p0 = scmp.ne.s32.totalorder %s54_s14, 0 }
   0xc   :  { %58 = shalt.err (%p67_p0)  }

</bundles_post_ra>
